<compile_context>
chip_gen: v7x
topology: tpu7x:2x2x1
jax: 0.10.0
libtpu: 0.0.40
codegen_flags: <defaults>
</compile_context>

<pallas_src>
import functools
import numpy as np
import jax
import jax.numpy as jnp
from jax.experimental import pallas as pl
from jax.experimental.pallas import tpu as pltpu


def _round_up(x, m):
    return ((x + m - 1) // m) * m


# ----------------------- deterministic parameter construction -----------------------
def hann_window_periodic(n):
    k = jnp.arange(n, dtype=jnp.float32)
    return 0.5 - 0.5 * jnp.cos(2.0 * jnp.pi * k / n)


def dft_matrices(n_fft):
    """Real/imag DFT matrices, one-sided: shape (n_fft, n_freq)."""
    n_freq = n_fft // 2 + 1
    n = jnp.arange(n_fft, dtype=jnp.float32)[:, None]
    k = jnp.arange(n_freq, dtype=jnp.float32)[None, :]
    ang = 2.0 * jnp.pi * n * k / n_fft
    return jnp.cos(ang), -jnp.sin(ang)


def melscale_fbanks(n_freqs, f_min, f_max, n_mels, sample_rate):
    """torchaudio.functional.melscale_fbanks (htk scale, norm=None): (n_freqs, n_mels)."""
    def hz_to_mel(f):
        return 2595.0 * jnp.log10(1.0 + f / 700.0)

    def mel_to_hz(m):
        return 700.0 * (10.0 ** (m / 2595.0) - 1.0)

    all_freqs = jnp.linspace(0.0, float(sample_rate // 2), n_freqs)
    m_pts = jnp.linspace(hz_to_mel(jnp.float32(f_min)), hz_to_mel(jnp.float32(f_max)),
                         n_mels + 2)
    f_pts = mel_to_hz(m_pts)
    f_diff = f_pts[1:] - f_pts[:-1]
    slopes = f_pts[None, :] - all_freqs[:, None]           # (n_freqs, n_mels + 2)
    down = -slopes[:, :-2] / f_diff[:-1]
    up = slopes[:, 2:] / f_diff[1:]
    fb = jnp.maximum(0.0, jnp.minimum(down, up))
    return fb.astype(jnp.float32)


# ------------------------------------ Pallas kernel ----------------------------------
def _featurizer_kernel(frames_ref, lens_ref, w_ref, fb_ref, out_ref, *, n_frames_real):
    # frames_ref : (Bt * nf_pad, n_fft)     window-unweighted frames, batch*time flattened
    # lens_ref   : (Bt, 1, 1) int32         per-batch valid-frame counts
    # w_ref      : (n_fft, 2*fpad)          window-folded [cos | sin] DFT weights (lane-aligned)
    # fb_ref     : (fpad, mpad)             zero-padded mel filterbank
    # out_ref    : (Bt, nf_pad, mpad)       lane-dense (128-wide) output slab
    bt, nf_pad, mpad = out_ref.shape
    fpad = w_ref.shape[1] // 2

    # One fused MXU matmul for the whole (windowed) one-sided DFT.
    y = jnp.dot(frames_ref[...], w_ref[...], preferred_element_type=jnp.float32)
    re = y[:, :fpad]                       # lane-tile aligned slices
    im = y[:, fpad:]
    power = re * re + im * im              # power spectrogram (power=2.0)

    # Mel filterbank projection: full (M, 128) @ (128, 128) MXU tile.
    mel = jnp.dot(power, fb_ref[...], preferred_element_type=jnp.float32)

    # Back to (batch, time, mel) — sublane split at a multiple of 8, full 128 lanes.
    mel = mel.reshape(bt, nf_pad, mpad)

    # Mean subtraction over the (real) time axis; zero-padded frames add exactly 0.
    mel = mel - jnp.sum(mel, axis=1, keepdims=True) * (1.0 / n_frames_real)

    # Length masking: frames >= input_lens[b] are zeroed.
    fidx = jax.lax.broadcasted_iota(jnp.int32, (bt, nf_pad, 1), 1)
    mask = fidx < lens_ref[...]
    out_ref[...] = jnp.where(mask, mel, 0.0)


def audio_featurizer(waveforms, input_lens_ratio, *, sample_rate=16000, n_fft=64,
                     hop_length=32, n_mels=32):
    waveforms = jnp.asarray(waveforms, jnp.float32)
    if waveforms.ndim == 1:
        waveforms = waveforms[None, :]
    B, T = waveforms.shape
    n_freq = n_fft // 2 + 1

    # --- glue: center=True reflect padding + strided framing (XLA) ---
    # Note: for very long audio, frames (2x the waveform bytes when n_fft == 2*hop)
    # could instead be built in-kernel from hop-sized chunks to halve HBM traffic.
    pad = n_fft // 2
    padded = jnp.pad(waveforms, ((0, 0), (pad, pad)), mode="reflect")
    n_frames = 1 + T // hop_length
    starts = jnp.arange(n_frames) * hop_length
    gather_idx = starts[:, None] + jnp.arange(n_fft)[None, :]      # (n_frames, n_fft)
    frames = padded[:, gather_idx]                                 # (B, n_frames, n_fft)

    # Pad the time axis to a sublane multiple so the flat (Bt*nf, n_fft) layout is a
    # trivial retile; padded (zero) frames contribute nothing and are sliced off below.
    nf_pad = _round_up(n_frames, 8)
    if nf_pad != n_frames:
        frames = jnp.pad(frames, ((0, 0), (0, nf_pad - n_frames), (0, 0)))
    frames_flat = frames.reshape(B * nf_pad, n_fft)

    # --- fused deterministic "parameters" ---
    fpad = _round_up(n_freq, 128)                # cos / sin halves, each lane-tile padded
    mpad = _round_up(n_mels, 128)
    window = hann_window_periodic(n_fft)
    cos_m, sin_m = dft_matrices(n_fft)                             # (n_fft, n_freq)
    w = jnp.zeros((n_fft, 2 * fpad), jnp.float32)
    w = w.at[:, :n_freq].set(window[:, None] * cos_m)              # window folded in
    w = w.at[:, fpad:fpad + n_freq].set(window[:, None] * sin_m)
    fb = melscale_fbanks(n_freq, 0.0, sample_rate / 2.0, n_mels, sample_rate)
    fb_pad = jnp.zeros((fpad, mpad), jnp.float32).at[:n_freq, :n_mels].set(fb)

    input_lens = (jnp.asarray(input_lens_ratio, jnp.float32) * n_frames).astype(jnp.int32)
    lens3 = input_lens.reshape(B, 1, 1)

    # Batch chunking: fill the MXU M dimension (>=128 rows when B allows) while keeping
    # a parallel grid axis over chunks (sharded across TensorCores on multi-core chips).
    # For B=2 / n_frames=16 this is a single invocation with M = 32 rows.
    bt = min(B, max(1, pl.cdiv(128, nf_pad)))
    while B % bt:
        bt -= 1
    n_chunks = B // bt
    # For very long audio on small-VMEM parts, tile nf_pad on an extra grid axis
    # (two-pass mean) or raise vmem_limit_bytes; unnecessary at these sizes.

    grid_spec = pltpu.PrefetchScalarGridSpec(
        num_scalar_prefetch=0,
        grid=(n_chunks,),
        in_specs=[
            pl.BlockSpec((bt * nf_pad, n_fft), lambda c: (c, 0)),
            pl.BlockSpec((bt, 1, 1), lambda c: (c, 0, 0)),
            pl.BlockSpec((n_fft, 2 * fpad), lambda c: (0, 0)),
            pl.BlockSpec((fpad, mpad), lambda c: (0, 0)),
        ],
        out_specs=pl.BlockSpec((bt, nf_pad, mpad), lambda c: (c, 0, 0)),
    )
    out = pl.pallas_call(
        functools.partial(_featurizer_kernel, n_frames_real=n_frames),
        out_shape=jax.ShapeDtypeStruct((B, nf_pad, mpad), jnp.float32),
        grid_spec=grid_spec,
        compiler_params=pltpu.CompilerParams(dimension_semantics=("parallel",)),
    )(frames_flat, lens3, w, fb_pad)

    # Layout plumbing only: drop padded frames / padded mel lanes.
    return out[:, :n_frames, :n_mels]


# ------------------------------- pure-JAX reference ----------------------------------
def _reference(waveforms, input_lens_ratio, *, sample_rate=16000, n_fft=64,
               hop_length=32, n_mels=32):
    B, T = waveforms.shape
    n_freq = n_fft // 2 + 1
    pad = n_fft // 2
    padded = jnp.pad(waveforms, ((0, 0), (pad, pad)), mode="reflect")
    n_frames = 1 + T // hop_length
    idx = (jnp.arange(n_frames) * hop_length)[:, None] + jnp.arange(n_fft)[None, :]
    frames = padded[:, idx]
    window = hann_window_periodic(n_fft)
    cos_m, sin_m = dft_matrices(n_fft)
    fb = melscale_fbanks(n_freq, 0.0, sample_rate / 2.0, n_mels, sample_rate)
    x = frames * window[None, None, :]
    re = jnp.einsum("bfn,nk->bfk", x, cos_m)
    im = jnp.einsum("bfn,nk->bfk", x, sin_m)
    mel = jnp.einsum("bfk,km->bfm", re * re + im * im, fb)
    mel = mel - jnp.mean(mel, axis=1, keepdims=True)
    lens = (jnp.asarray(input_lens_ratio, jnp.float32) * n_frames).astype(jnp.int32)
    mask = (jnp.arange(n_frames)[None, :] < lens[:, None])[..., None]
    return jnp.where(mask, mel, 0.0)


if __name__ == "__main__":
    key = jax.random.PRNGKey(0)
    B, T = 2, 480
    k1, k2 = jax.random.split(key)
    waveforms = jax.random.normal(k1, (B, T), dtype=jnp.float32)
    input_lens_ratio = jnp.array([1.0, 0.6], dtype=jnp.float32)

    out = audio_featurizer(waveforms, input_lens_ratio)
    out = jax.block_until_ready(out)

    ref = _reference(waveforms, input_lens_ratio)
    np.testing.assert_allclose(np.asarray(out), np.asarray(ref), rtol=1e-4, atol=1e-3)
    print("KERNEL_OK")
</pallas_src>

<mosaic_0001>
module attributes {stable_mosaic.version = 11 : i64} {
  func.func @_featurizer_kernel(%arg0: i32, %arg1: memref<32x64xf32, #tpu.memory_space<vmem>>, %arg2: memref<2x1x1xi32, #tpu.memory_space<vmem>>, %arg3: memref<64x256xf32, #tpu.memory_space<vmem>>, %arg4: memref<128x128xf32, #tpu.memory_space<vmem>>, %arg5: memref<2x16x128xf32, #tpu.memory_space<vmem>>) attributes {dimension_semantics = [#tpu.dimension_semantics<parallel>], iteration_bounds = array<i64: 1>, scalar_prefetch = 0 : i64, scratch_operands = 0 : i64, tpu.core_type = #tpu.core_type<tc>, window_params = [{transform_indices = @transform_0, window_bounds = array<i64: 32, 64>}, {transform_indices = @transform_1, window_bounds = array<i64: 2, 1, 1>}, {pipeline_mode = #tpu.pipeline_mode<synchronous>, transform_indices = @transform_2, window_bounds = array<i64: 64, 256>}, {pipeline_mode = #tpu.pipeline_mode<synchronous>, transform_indices = @transform_3, window_bounds = array<i64: 128, 128>}, {transform_indices = @transform_4, window_bounds = array<i64: 2, 16, 128>}]} {
    %c0 = arith.constant 0 : index
    %c0_0 = arith.constant 0 : index
    %0 = vector.load %arg1[%c0, %c0_0] : memref<32x64xf32, #tpu.memory_space<vmem>>, vector<32x64xf32>
    %c0_1 = arith.constant 0 : index
    %c0_2 = arith.constant 0 : index
    %1 = vector.load %arg3[%c0_1, %c0_2] : memref<64x256xf32, #tpu.memory_space<vmem>>, vector<64x256xf32>
    %cst = arith.constant dense<0.000000e+00> : vector<32x256xf32>
    %2 = tpu.matmul %0, %1, %cst {dimension_numbers = #tpu.dot_dimension_numbers<[1], [0], [0], [1], [0, 0, 1, 1], [], []>} : vector<32x64xf32>, vector<64x256xf32>, vector<32x256xf32> -> vector<32x256xf32>
    %3 = vector.extract_strided_slice %2 {offsets = [0, 0], sizes = [32, 128], strides = [1, 1]} : vector<32x256xf32> to vector<32x128xf32>
    %4 = vector.extract_strided_slice %2 {offsets = [0, 128], sizes = [32, 128], strides = [1, 1]} : vector<32x256xf32> to vector<32x128xf32>
    %5 = arith.mulf %3, %3 : vector<32x128xf32>
    %6 = arith.mulf %4, %4 : vector<32x128xf32>
    %7 = arith.addf %5, %6 : vector<32x128xf32>
    %c0_3 = arith.constant 0 : index
    %c0_4 = arith.constant 0 : index
    %8 = vector.load %arg4[%c0_3, %c0_4] : memref<128x128xf32, #tpu.memory_space<vmem>>, vector<128x128xf32>
    %cst_5 = arith.constant dense<0.000000e+00> : vector<32x128xf32>
    %9 = tpu.matmul %7, %8, %cst_5 {dimension_numbers = #tpu.dot_dimension_numbers<[1], [0], [0], [1], [0, 0, 1, 1], [], []>} : vector<32x128xf32>, vector<128x128xf32>, vector<32x128xf32> -> vector<32x128xf32>
    %10 = vector.shape_cast %9 : vector<32x128xf32> to vector<2x16x128xf32>
    %cst_6 = arith.constant dense<0.000000e+00> : vector<2x128xf32>
    %11 = vector.multi_reduction <add>, %10, %cst_6 [1] : vector<2x16x128xf32> to vector<2x128xf32>
    %12 = vector.shape_cast %11 : vector<2x128xf32> to vector<2x1x128xf32>
    %cst_7 = arith.constant 6.250000e-02 : f32
    %13 = vector.broadcast %cst_7 : f32 to vector<2x1x128xf32>
    %14 = arith.mulf %12, %13 : vector<2x1x128xf32>
    %15 = vector.broadcast %14 : vector<2x1x128xf32> to vector<2x16x128xf32>
    %16 = arith.subf %10, %15 : vector<2x16x128xf32>
    %17 = tpu.iota {dimensions = array<i32: 1>} : vector<2x16x1xi32>
    %c0_8 = arith.constant 0 : index
    %c0_9 = arith.constant 0 : index
    %c0_10 = arith.constant 0 : index
    %18 = vector.load %arg2[%c0_8, %c0_9, %c0_10] : memref<2x1x1xi32, #tpu.memory_space<vmem>>, vector<2x1x1xi32>
    %19 = vector.broadcast %18 : vector<2x1x1xi32> to vector<2x16x1xi32>
    %20 = arith.cmpi slt, %17, %19 : vector<2x16x1xi32>
    %cst_11 = arith.constant 0.000000e+00 : f32
    %21 = vector.shape_cast %20 : vector<2x16x1xi1> to vector<2x16x1xi1>
    %22 = vector.broadcast %21 : vector<2x16x1xi1> to vector<2x16x128xi1>
    %23 = vector.broadcast %cst_11 : f32 to vector<2x16x128xf32>
    %24 = arith.select %22, %16, %23 : vector<2x16x128xi1>, vector<2x16x128xf32>
    %c0_12 = arith.constant 0 : index
    %c0_13 = arith.constant 0 : index
    %c0_14 = arith.constant 0 : index
    %25 = vector.load %arg5[%c0_12, %c0_13, %c0_14] : memref<2x16x128xf32, #tpu.memory_space<vmem>>, vector<2x16x128xf32>
    tpu.vector_store %arg5[%c0_12, %c0_13, %c0_14], %24 {strides = array<i32>} : memref<2x16x128xf32, #tpu.memory_space<vmem>>, vector<2x16x128xf32>,
    return
  }
  func.func @transform_0(%arg0: i32) -> (i32, i32) {
    %c0_i32 = arith.constant 0 : i32
    %c0_i32_0 = arith.constant 0 : i32
    return %arg0, %c0_i32 : i32, i32
  }
  func.func @transform_1(%arg0: i32) -> (i32, i32, i32) {
    %c0_i32 = arith.constant 0 : i32
    %c0_i32_0 = arith.constant 0 : i32
    %c0_i32_1 = arith.constant 0 : i32
    return %arg0, %c0_i32, %c0_i32_0 : i32, i32, i32
  }
  func.func @transform_2(%arg0: i32) -> (i32, i32) {
    %c0_i32 = arith.constant 0 : i32
    %c0_i32_0 = arith.constant 0 : i32
    %c0_i32_1 = arith.constant 0 : i32
    return %c0_i32, %c0_i32_0 : i32, i32
  }
  func.func @transform_3(%arg0: i32) -> (i32, i32) {
    %c0_i32 = arith.constant 0 : i32
    %c0_i32_0 = arith.constant 0 : i32
    %c0_i32_1 = arith.constant 0 : i32
    return %c0_i32, %c0_i32_0 : i32, i32
  }
  func.func @transform_4(%arg0: i32) -> (i32, i32, i32) {
    %c0_i32 = arith.constant 0 : i32
    %c0_i32_0 = arith.constant 0 : i32
    %c0_i32_1 = arith.constant 0 : i32
    return %arg0, %c0_i32, %c0_i32_0 : i32, i32, i32
  }
}

</mosaic_0001>

<bundles_post_ra>
// kernel: tpu_custom_call.1
= control target key start
LH: loop header
LB: loop body
LE: loop exit
PB: predicated region body
PF: predicated region fallthrough
CT: control target
= control target key end

     0   :  { %9 = vsyncpa [#allocation3], 0  ;;  %s701_s0 = inlined_call_operand.hbm [shape: f32[32,64], index: 0, kind: input, shape index: {}]   ;;  %s702_s1 = inlined_call_operand.vmem [shape: s32[2,1,1], index: 1, kind: input, shape index: {}]   ;;  %s703_s2 = inlined_call_operand.hbm [shape: f32[64,256], index: 2, kind: input, shape index: {}]   ;;  %s704_s3 = inlined_call_operand.hbm [shape: f32[128,128], index: 3, kind: input, shape index: {}]   ;;  %s705_s4 = inlined_call_operand.hbm [shape: f32[2,16,128], index: 4, kind: output, shape index: {}]  }
   0x1   :  { %10 = vsyncpa [#allocation6], 0 }
   0x2   :  { %11 = vsyncpa [#allocation4], 0  ;;  %s595_s15 = smov [#allocation5]   ;;  %s501_s19 = scalar_lea.hbm %s703_s2, 2048 }
   0x3   :  { %s31_s16 = sshll.u32 %s595_s15, 4  ;;  %p502_p0 = scmp.ne.s32.totalorder %s703_s2, %s501_s19  ;;  %s32_s16 = int_to_ptr.vmem [resolvable:$true] %s31_s16 }
   0x4   :  { %p505_p1 = scmp.lt.u32.totalorder %s501_s19, %s703_s2 }
   0x6   :  { %p507_p2 = pnand %p505_p1, %p502_p0 }
   0x8   :  { %510 = shalt.err (!%p507_p2)
}
   0x9   :  { %s511_s24 = scalar_lea.vmem %s32_s16, 2048  ;;  %p516_p4 = scmp.lt.s32.totalorder %s32_s16, %s32_s16 }
   0xa   :  { %p512_p3 = scmp.ne.s32.totalorder %s32_s16, %s511_s24  ;;  %p517_p5 = scmp.lt.s32.totalorder %s511_s24, %s511_s24 }
   0xc   :  { %p518_p6 = por %p517_p5, %p516_p4 }
   0xe   :  { %p519_p7 = pnand %p518_p6, %p512_p3 }
  0x10   :  { %522 = shalt.err (!%p519_p7)
}
  0x11   :  { %s596_s25 = smov 256   ;;  %s597_s26 = smov 16  }
  0x12   :  { %37 = dma.hbm_to_vmem [thread:$0]  %s703_s2, 2048, %s32_s16, [#allocation6], %s596_s25, %s596_s25, %s597_s26  }
  0x13   :  { %s598_s29 = smov [#allocation2]   ;;  %s523_s7 = scalar_lea.hbm %s701_s0, 512 }
  0x14   :  { %s17_s30 = sshll.u32 %s598_s29, 4  ;;  %p524_p8 = scmp.ne.s32.totalorder %s701_s0, %s523_s7  ;;  %s18_s30 = int_to_ptr.vmem [resolvable:$true] %s17_s30 }
  0x15   :  { %p527_p9 = scmp.lt.u32.totalorder %s523_s7, %s701_s0 }
  0x17   :  { %p529_p10 = pnand %p527_p9, %p524_p8 }
  0x19   :  { %532 = shalt.err (!%p529_p10)
}
  0x1a   :  { %s533_s12 = scalar_lea.vmem %s18_s30, 512  ;;  %p538_p12 = scmp.lt.s32.totalorder %s18_s30, %s18_s30 }
  0x1b   :  { %p534_p11 = scmp.ne.s32.totalorder %s18_s30, %s533_s12  ;;  %p539_p13 = scmp.lt.s32.totalorder %s533_s12, %s533_s12 }
  0x1d   :  { %p540_p0 = por %p539_p13, %p538_p12 }
  0x1f   :  { %p541_p1 = pnand %p540_p0, %p534_p11 }
  0x21   :  { %544 = shalt.err (!%p541_p1)
}
  0x22   :  { %s599_s2 = smov 128   ;;  %s600_s13 = smov 8  }
  0x23   :  { %23 = dma.hbm_to_vmem [thread:$0]  %s701_s0, 512, %s18_s30, [#allocation3], %s599_s2, %s599_s2, %s600_s13  }
  0x24   :  { %s601_s16 = smov [#allocation7]   ;;  %s545_s20 = scalar_lea.hbm %s704_s3, 2048 }
  0x25   :  { %s43_s17 = sshll.u32 %s601_s16, 4  ;;  %p546_p2 = scmp.ne.s32.totalorder %s704_s3, %s545_s20  ;;  %s44_s17 = int_to_ptr.vmem [resolvable:$true] %s43_s17 }
  0x26   :  { %p549_p3 = scmp.lt.u32.totalorder %s545_s20, %s704_s3 }
  0x28   :  { %p551_p4 = pnand %p549_p3, %p546_p2 }
  0x2a   :  { %554 = shalt.err (!%p551_p4)
}
  0x2b   :  { %s555_s25 = scalar_lea.vmem %s44_s17, 2048  ;;  %p560_p6 = scmp.lt.s32.totalorder %s44_s17, %s44_s17 }
  0x2c   :  { %p556_p5 = scmp.ne.s32.totalorder %s44_s17, %s555_s25  ;;  %p561_p7 = scmp.lt.s32.totalorder %s555_s25, %s555_s25 }
  0x2e   :  { %p562_p8 = por %p561_p7, %p560_p6 }
  0x30   :  { %p563_p9 = pnand %p562_p8, %p556_p5 }
  0x32   :  { %566 = shalt.err (!%p563_p9)
}
  0x33   :  { %49 = dma.hbm_to_vmem [thread:$0]  %s704_s3, 2048, %s44_s17, [#allocation6], %s599_s2, %s599_s2, %s600_s13  }
  0x34   :  { %589 = dma.done.wait [#allocation3], 512  }
  0x35   :  { %590 = vsyncadd [#allocation3], 4294966784 }
  0x36   :  { %591 = dma.done.wait [#allocation6], 4096  }
  0x37   :  { %592 = vsyncadd [#allocation6], 4294963200  ;;  %v602_v0 = vmov 0.0   ;;  %v64_v1 = vld [vmem:[#allocation5 + $0x8] sm:$0xff]  ;;  %v66_v2 = vld [vmem:[#allocation5 + $0x18] sm:$0xff]  ;;  %vm79_vm0 = vcmask 523264   ;;  %v314_v53 = vlaneseq }
  0x38   :  { %156 = vmatprep.mubr.f32.mxu0 %v602_v0  ;;  %v63_v3 = vld [vmem:[#allocation5] sm:$0xff]  ;;  %v441_v4 = vpack.c.bf16 %v66_v2, %v64_v1  ;;  %v65_v5 = vld [vmem:[#allocation5 + $0x10] sm:$0xff]  ;;  %v68_v6 = vld [vmem:[#allocation5 + $0x28] sm:$0xff]  ;;  %v603_v54 = vmov 0  }
  0x39   :  { %v70_v7 = vld [vmem:[#allocation5 + $0x38] sm:$0xff]  ;;  %v443_v8 = vpack.c.bf16 %v65_v5, %v63_v3  ;;  %v67_v10 = vld [vmem:[#allocation5 + $0x20] sm:$0xff]  ;;  %v69_v11 = vld [vmem:[#allocation5 + $0x30] sm:$0xff]  ;;  %499 = vset.pattern.permute.xlu0 %v603_v54  ;;  %500 = vset.pattern.permute.xlu1 %v603_v54  ;;  %v315_v57 = vshrl.u32 %v314_v53, 7 }
  0x3a   :  { %v445_v9 = vpack.c.bf16 %v70_v7, %v68_v6  ;;  %v72_v12 = vld [vmem:[#allocation5 + $0x48] sm:$0xff]  ;;  %442 = vmatprep.subr.bf16.mxu0 %v441_v4  ;;  %v74_v13 = vld [vmem:[#allocation5 + $0x58] sm:$0xff]  ;;  %v447_v14 = vpack.c.bf16 %v69_v11, %v67_v10  ;;  %v71_v16 = vld [vmem:[#allocation5 + $0x40] sm:$0xff] }
  0x3b   :  { %444 = vmatpush1.bf16.msra.mxu0 %v443_v8  ;;  %v449_v15 = vpack.c.bf16 %v74_v13, %v72_v12  ;;  %v73_v17 = vld [vmem:[#allocation5 + $0x50] sm:$0xff]  ;;  %v76_v18 = vld [vmem:[#allocation5 + $0x68] sm:$0xff]  ;;  %v78_v19 = vld [vmem:[#allocation5 + $0x78] sm:$0xff]  ;;  %v316_v58 = vadd.s32 8, %v315_v57 }
  0x3c   :  { %446 = vmatprep.subr.bf16.mxu0 %v445_v9  ;;  %v193_v20 = vld [vmem:[#allocation7] sm:$0xff]  ;;  %v194_v21 = vld [vmem:[#allocation7 + $0x8] sm:$0xff]  ;;  %v195_v22 = vld [vmem:[#allocation7 + $0x10] sm:$0xff]  ;;  %v451_v24 = vpack.c.bf16 %v73_v17, %v71_v16  ;;  %v453_v28 = vpack.c.bf16 %v78_v19, %v76_v18 }
  0x3d   :  { %v196_v23 = vld [vmem:[#allocation7 + $0x18] sm:$0xff]  ;;  %v75_v25 = vld [vmem:[#allocation5 + $0x60] sm:$0xff]  ;;  %v457_v26 = vpack.c.bf16 %v194_v21, %v193_v20  ;;  %v77_v29 = vld [vmem:[#allocation5 + $0x70] sm:$0xff] }
  0x3e   :  { %v461_v27 = vpack.c.bf16 %v196_v23, %v195_v22  ;;  %v197_v30 = vld [vmem:[#allocation7 + $0x20] sm:$0xff]  ;;  %v198_v31 = vld [vmem:[#allocation7 + $0x28] sm:$0xff]  ;;  %v455_v32 = vpack.c.bf16 %v77_v29, %v75_v25  ;;  %v199_v34 = vld [vmem:[#allocation7 + $0x30] sm:$0xff] }
  0x3f   :  { %448 = vmatpush1.bf16.msra.mxu0 %v447_v14  ;;  %458 = vmatprep.subr.bf16.mxu1 %v457_v26  ;;  %v465_v33 = vpack.c.bf16 %v198_v31, %v197_v30  ;;  %v200_v35 = vld [vmem:[#allocation7 + $0x38] sm:$0xff]  ;;  %v59_v36 = vld [vmem:[#allocation2] sm:$0xff]  ;;  %v202_v39 = vld [vmem:[#allocation7 + $0x48] sm:$0xff] }
  0x40   :  { %450 = vmatprep.subr.bf16.mxu0 %v449_v15  ;;  %460 = vmatpush3.bf16.msra.mxu1 %v457_v26  ;;  %v469_v37 = vpack.c.bf16 %v200_v35, %v199_v34  ;;  %v201_v38 = vld [vmem:[#allocation7 + $0x40] sm:$0xff]  ;;  %v60_v40 = vld [vmem:[#allocation2 + $0x8] sm:$0xff]  ;;  %v203_v42 = vld [vmem:[#allocation7 + $0x50] sm:$0xff] }
  0x41   :  { %462 = vmatprep.subr.bf16.mxu1 %v461_v27  ;;  %v473_v41 = vpack.c.bf16 %v202_v39, %v201_v38  ;;  %v204_v43 = vld [vmem:[#allocation7 + $0x58] sm:$0xff]  ;;  %v61_v44 = vld [vmem:[#allocation2 + $0x10] sm:$0xff]  ;;  %v205_v47 = vld [vmem:[#allocation7 + $0x60] sm:$0xff] }
  0x42   :  { %v477_v45 = vpack.c.bf16 %v204_v43, %v203_v42  ;;  %v62_v46 = vld [vmem:[#allocation2 + $0x18] sm:$0xff]  ;;  %v206_v48 = vld [vmem:[#allocation7 + $0x68] sm:$0xff]  ;;  %v207_v50 = vld [vmem:[#allocation7 + $0x70] sm:$0xff] }
  0x43   :  { %452 = vmatpush1.bf16.msra.mxu0 %v451_v24  ;;  %v481_v49 = vpack.c.bf16 %v206_v48, %v205_v47  ;;  %v208_v51 = vld [vmem:[#allocation7 + $0x78] sm:$0xff]  ;;  %v381_v55 = vld [vmem:[%s702_s1] ss:$0 sm:$0xff]  ;;  %v382_v56 = vld [vmem:[%s702_s1 + $0x1] ss:$0 sm:$0xff]  ;;  %s604_s1 = smov [#allocation8]  }
  0x44   :  { %454 = vmatprep.subr.bf16.mxu0 %v453_v28  ;;  %464 = vmatpush3.bf16.msra.mxu1 %v461_v27  ;;  %v485_v52 = vpack.c.bf16 %v208_v51, %v207_v50  ;;  %vm327_vm1 = vcmp.lt.s32.totalorder %v315_v57, %v381_v55  ;;  %vm329_vm2 = vcmp.lt.s32.totalorder %v315_v57, %v382_v56  ;;  %s364_s30 = sshll.u32 %s604_s1, 4  ;;  %s365_s30 = int_to_ptr.vmem [resolvable:$true] %s364_s30 }
  0x45   :  { %466 = vmatprep.subr.bf16.mxu1 %v465_v33  ;;  %v331_v59 = vsel %vm327_vm1, 1, %v603_v54  ;;  %v333_v60 = vsel %vm329_vm2, 1, %v603_v54  ;;  %vm328_vm3 = vcmp.lt.s32.totalorder %v316_v58, %v381_v55  ;;  %vm330_vm4 = vcmp.lt.s32.totalorder %v316_v58, %v382_v56  ;;  %s567_s5 = scalar_lea.vmem %s365_s30, 512  ;;  %p572_p11 = scmp.lt.s32.totalorder %s365_s30, %s365_s30 }
  0x46   :  { %336 = vperm.xlu0 %499, %v331_v59   ;;  %342 = vperm.xlu1 %500, %v333_v60   ;;  %v332_v61 = vsel %vm328_vm3, 1, %v603_v54  ;;  %v334_v62 = vsel %vm330_vm4, 1, %v603_v54  ;;  %p568_p10 = scmp.ne.s32.totalorder %s365_s30, %s567_s5  ;;  %p573_p12 = scmp.lt.s32.totalorder %s567_s5, %s567_s5 }
  0x47   :  { %456 = vmatpush1.bf16.msra.mxu0 %v455_v32 }
  0x48   :  { %468 = vmatpush3.bf16.msra.mxu1 %v465_v33  ;;  %p574_p13 = por %p573_p12, %p572_p11 }
  0x49   :  { %470 = vmatprep.subr.bf16.mxu1 %v469_v37 }
  0x4a   :  { %377 = vmatmul.mubr.msk.f32.vlgmr.msra.gmra.mrb[0].mxu0 %vm79_vm0, %v59_v36  ;;  %339 = vperm.xlu0 %499, %v332_v61   ;;  %p575_p0 = pnand %p574_p13, %p568_p10 }
  0x4b   :  { %162 = vmatprep.mubr.f32.mxu0 %v602_v0  ;;  %345 = vperm.xlu1 %500, %v334_v62  }
  0x4c   :  { %472 = vmatpush3.bf16.msra.mxu1 %v469_v37 }
  0x4d   :  { %474 = vmatprep.subr.bf16.mxu1 %v473_v41 }
  0x4e   :  { %378 = vmatmul.mubr.msk.f32.gmra.mrb[2].mxu0 %vm79_vm0, %v60_v40 }
  0x4f   :  { %168 = vmatprep.mubr.f32.mxu0 %v602_v0 }
  0x50   :  { %476 = vmatpush3.bf16.msra.mxu1 %v473_v41 }
  0x51   :  { %478 = vmatprep.subr.bf16.mxu1 %v477_v45 }
  0x52   :  { %379 = vmatmul.mubr.msk.f32.gmra.mrb[4].mxu0 %vm79_vm0, %v61_v44 }
  0x53   :  { %174 = vmatprep.mubr.f32.mxu0 %v602_v0 }
  0x54   :  { %480 = vmatpush3.bf16.msra.mxu1 %v477_v45 }
  0x55   :  { %482 = vmatprep.subr.bf16.mxu1 %v481_v49 }
  0x56   :  { %380 = vmatmul.mubr.msk.f32.gmra.mrb[6].mxu0 %vm79_vm0, %v62_v46 }
  0x58   :  { %484 = vmatpush3.bf16.msra.mxu1 %v481_v49 }
  0x59   :  { %486 = vmatprep.subr.bf16.mxu1 %v485_v52 }
  0x5c   :  { %488 = vmatpush3.bf16.msra.mxu1 %v485_v52 }
  0xc5   :  { %v337_v26 = vpop.permute.xlu0 %336  ;;  %v343_v39 = vpop.permute.xlu1 %342 }
  0xc6   :  { %vm347_vm5 = vcmp.eq.s32.totalorder %v337_v26, 1  ;;  %vm349_vm7 = vcmp.eq.s32.totalorder %v343_v39, 1 }
  0xc9   :  { %v340_v34 = vpop.permute.xlu0 %339 }
  0xca   :  { %vm348_vm6 = vcmp.eq.s32.totalorder %v340_v34, 1  ;;  %v346_v46 = vpop.permute.xlu1 %345 }
  0xcb   :  { %vm350_vm8 = vcmp.eq.s32.totalorder %v346_v46, 1 }
 0x11d   :  { %v158_v63 = vpop.f32.mrb[0].mxu0 }
 0x11e   :  { %v181_v0 = vmul.f32 %v158_v63, %v158_v63  ;;  %v160_v1 = vpop.f32.mrb[1].mxu0 }
 0x11f   :  { %v185_v2 = vmul.f32 %v160_v1, %v160_v1 }
 0x121   :  { %v164_v3 = vpop.f32.mrb[2].mxu0  ;;  %v189_v4 = vadd.f32 %v185_v2, %v181_v0 }
 0x122   :  { %v182_v5 = vmul.f32 %v164_v3, %v164_v3  ;;  %v166_v6 = vpop.f32.mrb[3].mxu0 }
 0x123   :  { %v186_v7 = vmul.f32 %v166_v6, %v166_v6  ;;  %435 = vmatprep.mubr.f32.mxu1 %v189_v4 }
 0x125   :  { %v190_v8 = vadd.f32 %v186_v7, %v182_v5  ;;  %v170_v9 = vpop.f32.mrb[4].mxu0 }
 0x126   :  { %v183_v10 = vmul.f32 %v170_v9, %v170_v9  ;;  %v172_v11 = vpop.f32.mrb[5].mxu0 }
 0x127   :  { %v187_v12 = vmul.f32 %v172_v11, %v172_v11  ;;  %436 = vmatmul.mubr.f32.vlgmr.msra.gmra.mrb[0].mxu1 %v190_v8 }
 0x129   :  { %v191_v13 = vadd.f32 %v187_v12, %v183_v10  ;;  %v176_v14 = vpop.f32.mrb[6].mxu0 }
 0x12a   :  { %v184_v15 = vmul.f32 %v176_v14, %v176_v14  ;;  %v178_v16 = vpop.f32.mrb[7].mxu0 }
 0x12b   :  { %v188_v17 = vmul.f32 %v178_v16, %v178_v16  ;;  %438 = vmatprep.mubr.f32.mxu1 %v191_v13 }
 0x12d   :  { %v192_v18 = vadd.f32 %v188_v17, %v184_v15 }
 0x12f   :  { %439 = vmatmul.mubr.f32.gmra.mrb[2].mxu1 %v192_v18 }
 0x1fa   :  { %v437_v19 = vpop.f32.mrb[0].mxu1 }
 0x1fb   :  { %v275_v20 = vpop.f32.mrb[1].mxu1 }
 0x1fc   :  { %v294_v21 = vadd.f32 %v437_v19, %v275_v20 }
 0x1fe   :  { %v295_v22 = vrot.slane %v294_v21, 4 }
 0x200   :  { %v296_v23 = vadd.f32 %v295_v22, %v294_v21 }
 0x202   :  { %v297_v24 = vrot.slane %v296_v23, 2  ;;  %v440_v25 = vpop.f32.mrb[2].mxu1 }
 0x203   :  { %v285_v27 = vpop.f32.mrb[3].mxu1 }
 0x204   :  { %v298_v28 = vadd.f32 %v297_v24, %v296_v23  ;;  %v301_v29 = vadd.f32 %v440_v25, %v285_v27 }
 0x206   :  { %v299_v30 = vrot.slane %v298_v28, 1  ;;  %v302_v31 = vrot.slane %v301_v29, 4 }
 0x208   :  { %v300_v32 = vadd.f32 %v299_v30, %v298_v28  ;;  %v303_v33 = vadd.f32 %v302_v31, %v301_v29 }
 0x20a   :  { %v308_v35 = vmul.f32 0.0625, %v300_v32  ;;  %v304_v36 = vrot.slane %v303_v33, 2 }
 0x20c   :  { %v310_v37 = vsub.f32 %v275_v20, %v308_v35  ;;  %v305_v38 = vadd.f32 %v304_v36, %v303_v33  ;;  %v311_v40 = vsub.f32 %v437_v19, %v308_v35 }
 0x20e   :  { %v306_v41 = vrot.slane %v305_v38, 1  ;;  %v351_v42 = vsel %vm347_vm5, %v310_v37, 0.0  ;;  %v352_v43 = vsel %vm348_vm6, %v311_v40, 0.0 }
 0x20f   :  { %355 = vst [vmem:[#allocation8] sm:$0xff] %v351_v42  ;;  %356 = vst [vmem:[#allocation8 + $0x8] sm:$0xff] %v352_v43 }
 0x210   :  { %v307_v44 = vadd.f32 %v306_v41, %v305_v38 }
 0x212   :  { %v309_v45 = vmul.f32 0.0625, %v307_v44 }
 0x214   :  { %v312_v47 = vsub.f32 %v285_v27, %v309_v45  ;;  %v313_v48 = vsub.f32 %v440_v25, %v309_v45 }
 0x216   :  { %v353_v49 = vsel %vm349_vm7, %v312_v47, 0.0  ;;  %v354_v50 = vsel %vm350_vm8, %v313_v48, 0.0 }
 0x217   :  { %357 = vst [vmem:[#allocation8 + $0x10] sm:$0xff] %v353_v49  ;;  %358 = vst [vmem:[#allocation8 + $0x18] sm:$0xff] %v354_v50 }
 0x218   :  { %578 = shalt.err (!%p575_p0)
}
 0x219   :  { %s579_s8 = scalar_lea.hbm %s705_s4, 512 }
 0x21a   :  { %p580_p1 = scmp.ne.s32.totalorder %s705_s4, %s579_s8  ;;  %p583_p2 = scmp.lt.u32.totalorder %s579_s8, %s705_s4 }
 0x21c   :  { %p585_p3 = pnand %p583_p2, %p580_p1 }
 0x21e   :  { %588 = shalt.err (!%p585_p3)
}
 0x21f   :  { %370 = dma.vmem_to_hbm [thread:$0]  %s365_s30, 512, %s705_s4, [#allocation4], %s599_s2, %s599_s2, %s600_s13  }
 0x220   :  { %593 = dma.done.wait [#allocation4], 512  }
 0x221   :  { %594 = vsyncadd [#allocation4], 4294966784 }
 0x222   :  { %374 = vsyncpa [#allocation3], 1 }
 0x223   :  { %375 = vsyncpa [#allocation6], 1 }
 0x224   :  { %376 = vsyncpa [#allocation4], 1 }

</bundles_post_ra>
